<compile_context>
chip_gen: v5e
topology: v5e:2x2
jax: 0.10.0
libtpu: 0.0.40
codegen_flags: <defaults>
</compile_context>

<pallas_src>
import functools

import jax
import jax.numpy as jnp
from jax.experimental import pallas as pl
from jax.experimental.pallas import tpu as pltpu


def _ce_label_smooth_mask_kernel(x_ref, t_ref, vis_ref, o_ref, acc_ref, *,
                                 epsilon: float, num_classes: int, batch: int,
                                 tiles_per_core: int, vis_is_column: bool):
    """One batch tile of smoothed, visibility-masked cross entropy.

    x_ref   : (TB, K) logits (producer dtype; widened to f32 in-kernel)
    t_ref   : (TB, 1) int32 target ids
    vis_ref : (TB, 1) or (TB, K) visibility mask/weights (producer dtype)
    o_ref   : (1, 1, 1) f32 per-core partial of loss (already scaled by 1/B)
    acc_ref : (TB, 1) f32 VMEM scratch, per-row accumulator across inner steps
    """
    p = pl.program_id(0)      # core-split ("parallel") axis
    i = pl.program_id(1)      # per-core batch-tile reduction ("arbitrary") axis

    @pl.when(i == 0)
    def _init():
        acc_ref[...] = jnp.zeros_like(acc_ref)

    x = x_ref[...].astype(jnp.float32)             # (TB, K)
    tb, k = x.shape
    t = t_ref[...]                                 # (TB, 1) int32

    # Numerically stable -log_softmax along the class axis.
    m = jnp.max(x, axis=1, keepdims=True)                            # (TB, 1)
    lse = jnp.log(jnp.sum(jnp.exp(x - m), axis=1, keepdims=True)) + m
    nll = lse - x                                                    # (TB, K)

    # Fused label-smoothing weight: one select + one cross-lane reduce.
    #   sum_k [((1-eps)*onehot + eps/K) * nll * vis]
    eps_k = epsilon / num_classes
    class_ids = jax.lax.broadcasted_iota(jnp.int32, (tb, k), 1)
    w = jnp.where(class_ids == t, (1.0 - epsilon) + eps_k, eps_k)    # (TB, K)

    if vis_is_column:
        row = jnp.sum(nll * w, axis=1, keepdims=True)                # (TB, 1)
        row = row * vis_ref[...].astype(jnp.float32)
    else:
        row = jnp.sum(nll * (w * vis_ref[...].astype(jnp.float32)),
                      axis=1, keepdims=True)                         # (TB, 1)

    # Mask ragged last tile and duplicated (index-clamped) tiles past batch end
    # (jnp.where so garbage/NaN rows in padded blocks cannot leak in).
    tile_idx = p * tiles_per_core + i
    row_ids = tile_idx * tb + jax.lax.broadcasted_iota(jnp.int32, (tb, 1), 0)
    row = jnp.where(row_ids < batch, row, 0.0)

    # Element-wise accumulate; cross-sublane reduce deferred to finalize.
    acc_ref[...] += row

    @pl.when(i == pl.num_programs(1) - 1)
    def _finalize():
        # .mean(0).sum() == (1/B)*sum over rows; each core emits its share /B.
        total = jnp.sum(acc_ref[...]) * (1.0 / batch)
        o_ref[...] = jnp.reshape(total, (1, 1, 1))


def cross_entropy_label_smooth_mask(inputs, targets, vis, num_classes,
                                    epsilon=0.1, block_batch=512):
    """inputs: (B, K) float logits; targets: (B,) int class ids; vis: mask of
    shape (B,), (B,1) or (B,K) (any float/bool dtype).  Returns scalar loss."""
    B, K = inputs.shape
    assert K == num_classes

    t = targets.astype(jnp.int32).reshape(B, 1)

    vis = jnp.asarray(vis)
    if vis.ndim == 0:
        vis = vis.reshape(1, 1)
    if vis.ndim == 1:
        vis = vis.reshape(-1, 1)
    if vis.shape[-1] == 1:
        vis = jnp.broadcast_to(vis, (B, 1))      # tiny column, no (B,K) in HBM
        vis_is_column = True
    else:
        vis = jnp.broadcast_to(vis, (B, K))      # keep producer dtype
        vis_is_column = False

    # --- tile sizing, accounting for in-kernel f32 intermediates ------------
    vis_row_bytes = vis.dtype.itemsize * (1 if vis_is_column else K)
    in_row_bytes = K * inputs.dtype.itemsize + vis_row_bytes + 4   # + int32 tgt
    f32_tmp_row_bytes = 3 * K * 4          # ~3 live (tb,K) f32 passes (x/nll/w*)
    vmem_budget = 12 * 1024 * 1024         # fits v5e 16MiB default, v7x 32MiB
    max_rows = max(8, vmem_budget // (2 * in_row_bytes + f32_tmp_row_bytes))

    min_itemsize = min(inputs.dtype.itemsize, vis.dtype.itemsize)
    align = max(8, 32 // max(1, int(min_itemsize)))   # sublane packing bf16/int8

    tb = min(block_batch, max_rows)
    if tb >= B:
        tb = B                                   # block == full array dim: OK
    else:
        tb = max(align, (tb // align) * align)

    n_tiles = pl.cdiv(B, tb)
    num_cores = 2 if n_tiles >= 2 else 1         # 2 TCs on v7x; harmless on 1-TC
    tiles_per_core = pl.cdiv(n_tiles, num_cores)
    grid = (num_cores, tiles_per_core)

    def tile_map(p, i):
        # Clamp so the trailing core's overhang re-reads the last valid tile;
        # those rows are fully masked in-kernel.
        tile = jnp.minimum(p * tiles_per_core + i, n_tiles - 1)
        return (tile, 0)

    est_bytes = 2 * tb * in_row_bytes + tb * f32_tmp_row_bytes + tb * 8 + 4096
    vmem_limit = int(min(32 * 1024 * 1024, max(2 * est_bytes, 16 * 1024 * 1024)))

    kernel = functools.partial(
        _ce_label_smooth_mask_kernel,
        epsilon=float(epsilon), num_classes=int(num_classes), batch=int(B),
        tiles_per_core=int(tiles_per_core), vis_is_column=vis_is_column)

    cost = pl.CostEstimate(
        flops=6 * B * K,
        transcendentals=B * K + B,
        bytes_accessed=(B * K * inputs.dtype.itemsize
                        + B * vis_row_bytes + B * 4 + num_cores * 4),
    )

    out = pl.pallas_call(
        kernel,
        out_shape=jax.ShapeDtypeStruct((num_cores, 1, 1), jnp.float32),
        grid=grid,
        in_specs=[
            pl.BlockSpec((tb, K), tile_map),                           # logits
            pl.BlockSpec((tb, 1), tile_map),                           # targets
            pl.BlockSpec((tb, 1 if vis_is_column else K), tile_map),   # vis
        ],
        out_specs=pl.BlockSpec((1, 1, 1), lambda p, i: (p, 0, 0)),
        scratch_shapes=[pltpu.VMEM((tb, 1), jnp.float32)],
        compiler_params=pltpu.CompilerParams(
            dimension_semantics=("parallel", "arbitrary"),
            vmem_limit_bytes=vmem_limit),
        cost_estimate=cost,
    )(inputs, t, vis)

    return jnp.sum(out)     # sum per-core partials (each already scaled by 1/B)


if __name__ == "__main__":
    num_classes = 32
    batch = 8
    epsilon = 0.1

    key = jax.random.PRNGKey(0)
    k1, k2, k3 = jax.random.split(key, 3)
    logits = jax.random.normal(k1, (batch, num_classes), dtype=jnp.float32)
    labels = jax.random.randint(k2, (batch,), 0, num_classes, dtype=jnp.int32)
    vis = jax.random.bernoulli(k3, 0.7, (batch, num_classes)).astype(jnp.float32)

    loss = cross_entropy_label_smooth_mask(logits, labels, vis,
                                           num_classes, epsilon)
    loss = jax.block_until_ready(loss)

    # Pure-JAX reference (mirrors the PyTorch forward).
    log_probs = jax.nn.log_softmax(logits, axis=1)
    onehot = jax.nn.one_hot(labels, num_classes, dtype=jnp.float32)
    smoothed = (1.0 - epsilon) * onehot + epsilon / num_classes
    ref = jnp.sum(jnp.mean(-smoothed * log_probs * vis, axis=0))
    assert jnp.allclose(loss, ref, rtol=1e-5, atol=1e-5), (loss, ref)

    # Also exercise the (B,)-shaped visibility (column) fast path.
    vis_col = jax.random.bernoulli(k3, 0.7, (batch,)).astype(jnp.float32)
    loss_c = jax.block_until_ready(
        cross_entropy_label_smooth_mask(logits, labels, vis_col,
                                        num_classes, epsilon))
    ref_c = jnp.sum(jnp.mean(-smoothed * log_probs * vis_col[:, None], axis=0))
    assert jnp.allclose(loss_c, ref_c, rtol=1e-5, atol=1e-5), (loss_c, ref_c)

    print("KERNEL_OK")
</pallas_src>

<mosaic_0001>
module attributes {stable_mosaic.version = 11 : i64} {
  func.func @_ce_label_smooth_mask_kernel(%arg0: i32, %arg1: i32, %arg2: memref<8x32xf32, #tpu.memory_space<vmem>>, %arg3: memref<8x1xi32, #tpu.memory_space<vmem>>, %arg4: memref<8x32xf32, #tpu.memory_space<vmem>>, %arg5: memref<1x1x1xf32, #tpu.memory_space<vmem>>, %arg6: memref<8x1xf32, #tpu.memory_space<vmem>>) attributes {dimension_semantics = [#tpu.dimension_semantics<parallel>, #tpu.dimension_semantics<arbitrary>], iteration_bounds = array<i64: 1, 1>, scalar_prefetch = 0 : i64, scratch_operands = 1 : i64, tpu.core_type = #tpu.core_type<tc>, window_params = [{transform_indices = @transform_0, window_bounds = array<i64: 8, 32>}, {transform_indices = @transform_1, window_bounds = array<i64: 8, 1>}, {transform_indices = @transform_2, window_bounds = array<i64: 8, 32>}, {transform_indices = @transform_3, window_bounds = array<i64: 1, 1, 1>}]} {
    %c0_i32 = arith.constant 0 : i32
    %0 = arith.cmpi eq, %arg1, %c0_i32 : i32
    %1 = arith.extui %0 : i1 to i32
    %c0_i32_0 = arith.constant 0 : i32
    %2 = arith.cmpi ne, %1, %c0_i32_0 : i32
    scf.if %2 {
      %cst_18 = arith.constant 0.000000e+00 : f32
      %43 = vector.broadcast %cst_18 : f32 to vector<8x1xf32>
      %c0_19 = arith.constant 0 : index
      %c0_20 = arith.constant 0 : index
      %44 = vector.load %arg6[%c0_19, %c0_20] : memref<8x1xf32, #tpu.memory_space<vmem>>, vector<8x1xf32>
      tpu.vector_store %arg6[%c0_19, %c0_20], %43 {strides = array<i32>} : memref<8x1xf32, #tpu.memory_space<vmem>>, vector<8x1xf32>,
    } else {
    }
    %c0 = arith.constant 0 : index
    %c0_1 = arith.constant 0 : index
    %3 = vector.load %arg2[%c0, %c0_1] : memref<8x32xf32, #tpu.memory_space<vmem>>, vector<8x32xf32>
    %c0_2 = arith.constant 0 : index
    %c0_3 = arith.constant 0 : index
    %4 = vector.load %arg3[%c0_2, %c0_3] : memref<8x1xi32, #tpu.memory_space<vmem>>, vector<8x1xi32>
    %cst = arith.constant dense<0xFF800000> : vector<8xf32>
    %5 = vector.multi_reduction <maximumf>, %3, %cst [1] : vector<8x32xf32> to vector<8xf32>
    %6 = vector.shape_cast %5 : vector<8xf32> to vector<8x1xf32>
    %7 = vector.broadcast %6 : vector<8x1xf32> to vector<8x32xf32>
    %8 = arith.subf %3, %7 : vector<8x32xf32>
    %9 = math.exp %8 : vector<8x32xf32>
    %cst_4 = arith.constant dense<0.000000e+00> : vector<8xf32>
    %10 = vector.multi_reduction <add>, %9, %cst_4 [1] : vector<8x32xf32> to vector<8xf32>
    %11 = vector.shape_cast %10 : vector<8xf32> to vector<8x1xf32>
    %12 = math.log %11 : vector<8x1xf32>
    %13 = arith.addf %12, %6 : vector<8x1xf32>
    %14 = vector.broadcast %13 : vector<8x1xf32> to vector<8x32xf32>
    %15 = arith.subf %14, %3 : vector<8x32xf32>
    %16 = tpu.iota {dimensions = array<i32: 1>} : vector<8x32xi32>
    %17 = vector.broadcast %4 : vector<8x1xi32> to vector<8x32xi32>
    %18 = arith.cmpi eq, %16, %17 : vector<8x32xi32>
    %cst_5 = arith.constant 0.903124988 : f32
    %cst_6 = arith.constant 3.125000e-03 : f32
    %19 = vector.broadcast %cst_5 : f32 to vector<8x32xf32>
    %20 = vector.broadcast %cst_6 : f32 to vector<8x32xf32>
    %21 = arith.select %18, %19, %20 : vector<8x32xi1>, vector<8x32xf32>
    %c0_7 = arith.constant 0 : index
    %c0_8 = arith.constant 0 : index
    %22 = vector.load %arg4[%c0_7, %c0_8] : memref<8x32xf32, #tpu.memory_space<vmem>>, vector<8x32xf32>
    %23 = arith.mulf %21, %22 : vector<8x32xf32>
    %24 = arith.mulf %15, %23 : vector<8x32xf32>
    %cst_9 = arith.constant dense<0.000000e+00> : vector<8xf32>
    %25 = vector.multi_reduction <add>, %24, %cst_9 [1] : vector<8x32xf32> to vector<8xf32>
    %26 = vector.shape_cast %25 : vector<8xf32> to vector<8x1xf32>
    %c1_i32 = arith.constant 1 : i32
    %27 = arith.muli %arg0, %c1_i32 : i32
    %28 = arith.addi %27, %arg1 : i32
    %c8_i32 = arith.constant 8 : i32
    %29 = arith.muli %28, %c8_i32 : i32
    %30 = tpu.iota {dimensions = array<i32: 0>} : vector<8x1xi32>
    %31 = vector.broadcast %29 : i32 to vector<8x1xi32>
    %32 = arith.addi %31, %30 : vector<8x1xi32>
    %c8_i32_10 = arith.constant 8 : i32
    %33 = vector.broadcast %c8_i32_10 : i32 to vector<8x1xi32>
    %34 = arith.cmpi slt, %32, %33 : vector<8x1xi32>
    %cst_11 = arith.constant 0.000000e+00 : f32
    %35 = vector.broadcast %cst_11 : f32 to vector<8x1xf32>
    %36 = arith.select %34, %26, %35 : vector<8x1xi1>, vector<8x1xf32>
    %c0_12 = arith.constant 0 : index
    %c0_13 = arith.constant 0 : index
    %37 = vector.load %arg6[%c0_12, %c0_13] : memref<8x1xf32, #tpu.memory_space<vmem>>, vector<8x1xf32>
    %38 = arith.addf %37, %36 : vector<8x1xf32>
    %c0_14 = arith.constant 0 : index
    %c0_15 = arith.constant 0 : index
    %39 = vector.load %arg6[%c0_14, %c0_15] : memref<8x1xf32, #tpu.memory_space<vmem>>, vector<8x1xf32>
    tpu.vector_store %arg6[%c0_14, %c0_15], %38 {strides = array<i32>} : memref<8x1xf32, #tpu.memory_space<vmem>>, vector<8x1xf32>,
    %c0_i32_16 = arith.constant 0 : i32
    %40 = arith.cmpi eq, %arg1, %c0_i32_16 : i32
    %41 = arith.extui %40 : i1 to i32
    %c0_i32_17 = arith.constant 0 : i32
    %42 = arith.cmpi ne, %41, %c0_i32_17 : i32
    scf.if %42 {
      %c0_18 = arith.constant 0 : index
      %c0_19 = arith.constant 0 : index
      %43 = vector.load %arg6[%c0_18, %c0_19] : memref<8x1xf32, #tpu.memory_space<vmem>>, vector<8x1xf32>
      %44 = vector.shape_cast %43 : vector<8x1xf32> to vector<1x8x1xf32>
      %cst_20 = arith.constant dense<0.000000e+00> : vector<1xf32>
      %45 = vector.multi_reduction <add>, %44, %cst_20 [1, 2] : vector<1x8x1xf32> to vector<1xf32>
      %46 = vector.shape_cast %45 : vector<1xf32> to vector<1x1x1xf32>
      %47 = vector.extract %46[0, 0, 0] : f32 from vector<1x1x1xf32>
      %cst_21 = arith.constant 1.250000e-01 : f32
      %48 = arith.mulf %47, %cst_21 : f32
      %49 = vector.broadcast %48 : f32 to vector<1x1x1xf32>
      %c0_22 = arith.constant 0 : index
      %c0_23 = arith.constant 0 : index
      %c0_24 = arith.constant 0 : index
      %50 = vector.load %arg5[%c0_22, %c0_23, %c0_24] : memref<1x1x1xf32, #tpu.memory_space<vmem>>, vector<1x1x1xf32>
      tpu.vector_store %arg5[%c0_22, %c0_23, %c0_24], %49 {strides = array<i32>} : memref<1x1x1xf32, #tpu.memory_space<vmem>>, vector<1x1x1xf32>,
    } else {
    }
    return
  }
  func.func @transform_0(%arg0: i32, %arg1: i32) -> (i32, i32) {
    %c1_i32 = arith.constant 1 : i32
    %0 = arith.muli %arg0, %c1_i32 : i32
    %1 = arith.addi %0, %arg1 : i32
    %c0_i32 = arith.constant 0 : i32
    %2 = arith.minsi %1, %c0_i32 : i32
    %c0_i32_0 = arith.constant 0 : i32
    %c0_i32_1 = arith.constant 0 : i32
    return %2, %c0_i32_0 : i32, i32
  }
  func.func @transform_1(%arg0: i32, %arg1: i32) -> (i32, i32) {
    %c1_i32 = arith.constant 1 : i32
    %0 = arith.muli %arg0, %c1_i32 : i32
    %1 = arith.addi %0, %arg1 : i32
    %c0_i32 = arith.constant 0 : i32
    %2 = arith.minsi %1, %c0_i32 : i32
    %c0_i32_0 = arith.constant 0 : i32
    %c0_i32_1 = arith.constant 0 : i32
    return %2, %c0_i32_0 : i32, i32
  }
  func.func @transform_2(%arg0: i32, %arg1: i32) -> (i32, i32) {
    %c1_i32 = arith.constant 1 : i32
    %0 = arith.muli %arg0, %c1_i32 : i32
    %1 = arith.addi %0, %arg1 : i32
    %c0_i32 = arith.constant 0 : i32
    %2 = arith.minsi %1, %c0_i32 : i32
    %c0_i32_0 = arith.constant 0 : i32
    %c0_i32_1 = arith.constant 0 : i32
    return %2, %c0_i32_0 : i32, i32
  }
  func.func @transform_3(%arg0: i32, %arg1: i32) -> (i32, i32, i32) {
    %c0_i32 = arith.constant 0 : i32
    %c0_i32_0 = arith.constant 0 : i32
    %c0_i32_1 = arith.constant 0 : i32
    return %arg0, %c0_i32, %c0_i32_0 : i32, i32, i32
  }
}

</mosaic_0001>

<bundles_post_ra>
// kernel: tpu_custom_call.1
= control target key start
LH: loop header
LB: loop body
LE: loop exit
PB: predicated region body
PF: predicated region fallthrough
CT: control target
= control target key end

     0   :  { %8 = vsyncpa [#allocation4], 0  ;;  %s295_s0 = inlined_call_operand.vmem [shape: f32[8,32], index: 0, kind: input, shape index: {}]   ;;  %s296_s1 = inlined_call_operand.vmem [shape: s32[8,1], index: 1, kind: input, shape index: {}]   ;;  %s297_s2 = inlined_call_operand.hbm [shape: f32[8,32], index: 2, kind: input, shape index: {}]   ;;  %s298_s3 = inlined_call_operand.hbm [shape: f32[1,1,1], index: 3, kind: output, shape index: {}]  }
   0x1   :  { %9 = vsyncpa [#allocation5], 0  ;;  %s44_s14 = sshll.u32 %s297_s2, 4  ;;  %s252_s15 = smov [#allocation3]   ;;  %s45_s14 = int_to_ptr.hbm [resolvable:$true] %s44_s14 }
   0x2   :  { %s46_s16 = sshll.u32 %s252_s15, 4  ;;  %s47_s16 = int_to_ptr.vmem [resolvable:$true] %s46_s16 }
   0x3   :  { %49 = dma.hbm_to_vmem [thread:$0]  %s45_s14, 128, %s47_s16, [#allocation4]  }
   0x4   :  { %248 = dma.done.wait [#allocation4], 128  }
   0x5   :  { %249 = vsyncadd [#allocation4], 4294967168  ;;  %vm99_vm0 = vcmask 261120   ;;  %v97_v0 = vld [vmem:[%s295_s0] sm:$0xff]  ;;  %v253_v3 = vmov 0   ;;  %vm95_vm1 = vcmask 7168   ;;  %v113_v10 = vlaneseq }
   0x6   :  { %v100_v1 = vsel %vm99_vm0, %v97_v0, -inf  ;;  %v98_v2 = vld [vmem:[%s296_s1] sm:$0xff]  ;;  %194 = vset.pattern.permute.xlu1 %v253_v3  ;;  %195 = vset.pattern.permute.xlu0 %v253_v3  ;;  %v254_v9 = vmov 0.0   ;;  %v120_v15 = vld [vmem:[#allocation3] sm:$0xff]  ;;  %v255_v16 = vmov 0.003125  }
   0x7   :  { %101 = vmax.xlane.f32.xlu0 %v100_v1  ;;  %116 = vperm.xlu1 %194, %v98_v2   ;;  %96 = vst.msk [vmem:[#allocation2] sm:$0xff] %vm95_vm1, %v254_v9  ;;  %v114_v12 = vand.u32 127, %v113_v10  ;;  %s256_s0 = smov [#allocation6]   ;;  %s163_s22 = sshll.u32 %s298_s3, 4  ;;  %vm154_vm3 = vcmask 0   ;;  %s164_s22 = int_to_ptr.hbm [resolvable:$true] %s163_s22 }
   0x8   :  { %s161_s1 = sshll.u32 %s256_s0, 4  ;;  %s162_s1 = int_to_ptr.vmem [resolvable:$true] %s161_s1 }
   0xe   :  { %v134_v24 = vld [vmem:[#allocation2] sm:$0xff] }
  0x79   :  { %v117_v13 = vpop.permute.xlu1 %116 }
  0x7a   :  { %v102_v4 = vpop.xlane.xlu0 %101  ;;  %vm118_vm2 = vcmp.eq.s32.totalorder %v114_v12, %v117_v13 }
  0x7b   :  { %v103_v5 = vsub.f32 %v97_v0, %v102_v4  ;;  %v119_v17 = vsel %vm118_vm2, 0.903125, %v255_v16 }
  0x7c   :  { %v121_v20 = vmul.f32 %v120_v15, %v119_v17 }
  0x7d   :  { %v104_v6 = vmul.f32 1.442695, %v103_v5 }
  0x7f   :  { %196 = vpow2.f32 %v104_v6 }
  0x85   :  { %v197_v7 = vpop.eup %196 }
  0x86   :  { %v106_v8 = vsel %vm99_vm0, %v197_v7, 0.0 }
  0x87   :  { %107 = vadd.xlane.f32.xlu0 %v106_v8 }
  0xfa   :  { %v108_v11 = vpop.xlane.xlu0 %107 }
  0xfb   :  { %198 = vlog2.f32 %v108_v11 }
 0x101   :  { %v199_v14 = vpop.eup %198 }
 0x102   :  { %v110_v18 = vmul.f32 0.6931472, %v199_v14 }
 0x104   :  { %v111_v19 = vadd.f32 %v110_v18, %v102_v4 }
 0x106   :  { %v112_v21 = vsub.f32 %v111_v19, %v97_v0 }
 0x108   :  { %v122_v22 = vmul.f32 %v121_v20, %v112_v21 }
 0x10a   :  { %v123_v23 = vsel %vm99_vm0, %v122_v22, 0.0 }
 0x10b   :  { %124 = vadd.xlane.f32.xlu1 %v123_v23 }
 0x17e   :  { %v125_v25 = vpop.xlane.xlu1 %124 }
 0x17f   :  { %v135_v26 = vadd.f32 %v134_v24, %v125_v25 }
 0x181   :  { %137 = vst.msk [vmem:[#allocation2] sm:$0xff] %vm95_vm1, %v135_v26 }
 0x188   :  { %v141_v27 = vld [vmem:[#allocation2] sm:$0xff] }
 0x189   :  { %v142_v28 = vsel %vm95_vm1, %v141_v27, 0.0 }
 0x18a   :  { %143 = vadd.xlane.f32.xlu2 %v142_v28 }
 0x1fd   :  { %v144_v29 = vpop.xlane.xlu2 %143 }
 0x1fe   :  { %v145_v30 = vrot.slane %v144_v29, 4 }
 0x200   :  { %v146_v31 = vadd.f32 %v145_v30, %v144_v29 }
 0x202   :  { %v147_v32 = vrot.slane %v146_v31, 2 }
 0x204   :  { %v148_v33 = vadd.f32 %v147_v32, %v146_v31 }
 0x206   :  { %v149_v34 = vrot.slane %v148_v33, 1 }
 0x208   :  { %v150_v35 = vadd.f32 %v149_v34, %v148_v33 }
 0x20a   :  { %187 = vpush %v150_v35 }
 0x23b   :  { %s188_s23 = spop %187 }
 0x23c   :  { %s152_s24 = smul.f32 0.125, %s188_s23 }
 0x23e   :  { %v153_v36 = vstv %s152_s24 }
 0x23f   :  { %155 = vst.msk [vmem:[#allocation6] sm:$0x1] %vm154_vm3, %v153_v36 }
 0x240   :  { %166 = dma.vmem_to_hbm [thread:$0]  %s162_s1, 16, %s164_s22, [#allocation5]  }
 0x241   :  { %250 = dma.done.wait [#allocation5], 16  }
 0x242   :  { %251 = vsyncadd [#allocation5], 4294967280 }
 0x243   :  { %171 = vsyncpa [#allocation4], 1 }
 0x244   :  { %172 = vsyncpa [#allocation5], 1 }

</bundles_post_ra>
